<compile_context>
chip_gen: v5e
topology: v5e:2x2
jax: 0.10.0
libtpu: 0.0.40
codegen_flags: <defaults>
</compile_context>

<pallas_src>
import math
from functools import partial

import jax
import jax.numpy as jnp
from jax.experimental import pallas as pl
from jax.experimental.pallas import tpu as pltpu


# ------------------------------ small helpers --------------------------------

_VMEM_LIMIT_CACHE = None


def _vmem_limit_bytes():
    """48 MiB is safe on every generation (v7x has 64 MiB physical VMEM); on
    the 128 MiB parts (v5e/v6e) raise toward 96 MiB when the hardware query is
    available."""
    global _VMEM_LIMIT_CACHE
    if _VMEM_LIMIT_CACHE is None:
        limit = 48 * 1024 * 1024
        try:
            cap = int(pltpu.get_tpu_info().vmem_capacity_bytes)
            if cap >= 128 * 1024 * 1024:
                limit = 96 * 1024 * 1024
        except Exception:
            pass
        _VMEM_LIMIT_CACHE = limit
    return _VMEM_LIMIT_CACHE


def _pick_tile(dim, candidates, align):
    """Largest candidate that evenly divides `dim`; otherwise the largest
    divisor of `dim` that is a multiple of `align` (capped at max(candidates));
    otherwise the full dimension."""
    for c in candidates:
        if dim % c == 0:
            return c
    start = (min(max(candidates), dim) // align) * align
    for c in range(start, 0, -align):
        if dim % c == 0:
            return c
    # TODO(synk): pad awkward large dims instead of using a full-dim block.
    return dim


# ------------------------------- tiled linear --------------------------------

def _linear_kernel(x_ref, w_ref, b_ref, o_ref, acc_ref):
    k = pl.program_id(2)

    @pl.when(k == 0)
    def _init():
        acc_ref[...] = jnp.zeros(acc_ref.shape, acc_ref.dtype)

    acc_ref[...] += jnp.dot(x_ref[...], w_ref[...],
                            preferred_element_type=jnp.float32)

    @pl.when(k == pl.num_programs(2) - 1)
    def _store():
        o_ref[...] = (acc_ref[...] + b_ref[...]).astype(o_ref.dtype)


def linear(x, w, b, out_dtype):
    """(M,K) @ (K,N) + (1,N) -> (M,N).  bf16 MXU operands, f32 accumulation."""
    M, K = x.shape
    N = w.shape[1]
    tm = _pick_tile(M, (512, 256, 128), 8)
    tn = _pick_tile(N, (512, 256, 128), 128)
    tk = _pick_tile(K, (1024, 512, 256, 128), 128)
    grid = (M // tm, N // tn, K // tk)

    bytes_accessed = int(x.size * x.dtype.itemsize * (N // tn)
                         + w.size * w.dtype.itemsize * (M // tm)
                         + b.size * b.dtype.itemsize
                         + M * N * jnp.dtype(out_dtype).itemsize)

    return pl.pallas_call(
        _linear_kernel,
        out_shape=jax.ShapeDtypeStruct((M, N), out_dtype),
        grid=grid,
        in_specs=[
            pl.BlockSpec((tm, tk), lambda i, j, k: (i, k)),
            pl.BlockSpec((tk, tn), lambda i, j, k: (k, j)),
            pl.BlockSpec((1, tn), lambda i, j, k: (0, j)),
        ],
        out_specs=pl.BlockSpec((tm, tn), lambda i, j, k: (i, j)),
        scratch_shapes=[pltpu.VMEM((tm, tn), jnp.float32)],
        compiler_params=pltpu.CompilerParams(
            dimension_semantics=("parallel", "parallel", "arbitrary"),
            vmem_limit_bytes=_vmem_limit_bytes()),
        cost_estimate=pl.CostEstimate(flops=2 * M * N * K, transcendentals=0,
                                      bytes_accessed=bytes_accessed),
    )(x, w, b)


# ------------------------- flash-style self attention ------------------------

def _flash_kernel(q_ref, k_ref, v_ref, o_ref, m_sc, l_sc, acc_sc,
                  *, heads_per_block):
    ki = pl.program_id(3)
    n_kv = pl.num_programs(3)
    hw = q_ref.shape[-1]              # lane width of this block
    hd = hw // heads_per_block        # head dim

    @pl.when(ki == 0)
    def _init():
        m_sc[...] = jnp.full(m_sc.shape, -jnp.inf, jnp.float32)
        l_sc[...] = jnp.zeros(l_sc.shape, jnp.float32)
        acc_sc[...] = jnp.zeros(acc_sc.shape, jnp.float32)

    q = q_ref[0]                      # (tq, hw)  softmax scale pre-folded
    k = k_ref[0]                      # (tkv, hw)
    v = v_ref[0]                      # (tkv, hw)

    # On the per-head grid path heads_per_block == 1 and this loop runs once
    # on fully lane-aligned tiles (no masked sub-slices).
    for h in range(heads_per_block):
        sl = slice(h * hd, (h + 1) * hd)
        q_h = q[:, sl]
        k_h = k[:, sl]
        v_h = v[:, sl]

        # q @ k^T as a last-axis contraction (no in-kernel transpose).
        s = jax.lax.dot_general(q_h, k_h, (((1,), (1,)), ((), ())),
                                preferred_element_type=jnp.float32)   # (tq, tkv)

        m_prev = m_sc[:, h:h + 1]
        m_new = jnp.maximum(m_prev, jnp.max(s, axis=-1, keepdims=True))
        alpha = jnp.exp(m_prev - m_new)
        p = jnp.exp(s - m_new)                                        # (tq, tkv)
        l_sc[:, h:h + 1] = alpha * l_sc[:, h:h + 1] + jnp.sum(p, axis=-1,
                                                              keepdims=True)
        acc_sc[:, sl] = alpha * acc_sc[:, sl] + jnp.dot(
            p.astype(v_h.dtype), v_h, preferred_element_type=jnp.float32)
        m_sc[:, h:h + 1] = m_new

    @pl.when(ki == n_kv - 1)
    def _finalize():
        if heads_per_block == 1:
            o_ref[0] = (acc_sc[...] / l_sc[...]).astype(o_ref.dtype)
        else:
            for h in range(heads_per_block):
                sl = slice(h * hd, (h + 1) * hd)
                acc_sc[:, sl] = acc_sc[:, sl] / l_sc[:, h:h + 1]
            # single lane-dense (tq, C) store to HBM
            o_ref[0] = acc_sc[...].astype(o_ref.dtype)


def attention(q, k, v, n_head):
    """Non-causal multi-head attention.  q/k/v: (B,T,C), softmax scale already
    folded into q.  Returns (B,T,C)."""
    B, T, C = q.shape
    assert C % n_head == 0
    hd = C // n_head

    per_head_grid = (hd % 128 == 0)
    if per_head_grid:
        hw, heads_per_block, n_head_blocks = hd, 1, n_head
    else:
        hw, heads_per_block, n_head_blocks = C, n_head, 1

    tq = _pick_tile(T, (512, 256, 128), 8)
    tkv = _pick_tile(T, (512, 256, 128), 8)
    grid = (B, n_head_blocks, T // tq, T // tkv)

    isz = q.dtype.itemsize
    cost = pl.CostEstimate(
        flops=int(4 * B * T * T * C),
        transcendentals=int(B * n_head * T * T),
        bytes_accessed=int(q.size * isz
                           + (k.size + v.size) * isz * (T // tq)
                           + B * T * C * isz))

    kernel = partial(_flash_kernel, heads_per_block=heads_per_block)
    return pl.pallas_call(
        kernel,
        out_shape=jax.ShapeDtypeStruct((B, T, C), q.dtype),
        grid=grid,
        in_specs=[
            pl.BlockSpec((1, tq, hw), lambda b, h, qi, ki: (b, qi, h)),   # q
            pl.BlockSpec((1, tkv, hw), lambda b, h, qi, ki: (b, ki, h)),  # k
            pl.BlockSpec((1, tkv, hw), lambda b, h, qi, ki: (b, ki, h)),  # v
        ],
        out_specs=pl.BlockSpec((1, tq, hw), lambda b, h, qi, ki: (b, qi, h)),
        scratch_shapes=[
            pltpu.VMEM((tq, heads_per_block), jnp.float32),  # running max
            pltpu.VMEM((tq, heads_per_block), jnp.float32),  # running sum
            pltpu.VMEM((tq, hw), jnp.float32),               # output accumulator
        ],
        compiler_params=pltpu.CompilerParams(
            dimension_semantics=("parallel", "parallel", "parallel", "arbitrary"),
            vmem_limit_bytes=_vmem_limit_bytes()),
        cost_estimate=cost,
    )(q, k, v)


# -------------------------------- JAX wrapper ---------------------------------

def init_params(key, n_embed, n_head):
    """Parameters matching nn.Linear(C,3C) + nn.Linear(C,C).  The fused qkv
    weight is stored column-split (q/k/v) — identical math to computing the
    fused activation and .split()-ing it — and the attention scale
    1/sqrt(head_dim) is folded into the q projection.  Weights bf16 (MXU
    operand dtype), biases f32."""
    k1, k2, k3, k4 = jax.random.split(key, 4)
    bound = 1.0 / math.sqrt(n_embed)
    u = lambda k, shape: jax.random.uniform(k, shape, jnp.float32, -bound, bound)
    C = n_embed
    w_attn = u(k1, (C, 3 * C))          # == nn.Linear(C, 3C).weight.T
    b_attn = u(k2, (3 * C,))
    w_proj = u(k3, (C, C))
    b_proj = u(k4, (C,))

    scale = 1.0 / math.sqrt(C // n_head)
    return {
        "w_q": (w_attn[:, 0:C] * scale).astype(jnp.bfloat16),
        "b_q": (b_attn[0:C] * scale).reshape(1, C),
        "w_k": w_attn[:, C:2 * C].astype(jnp.bfloat16),
        "b_k": b_attn[C:2 * C].reshape(1, C),
        "w_v": w_attn[:, 2 * C:3 * C].astype(jnp.bfloat16),
        "b_v": b_attn[2 * C:3 * C].reshape(1, C),
        "w_proj": w_proj.astype(jnp.bfloat16),
        "b_proj": b_proj.reshape(1, C),
    }


def self_attention_forward(x, params, n_head):
    B, T, C = x.shape
    assert C % n_head == 0
    xb = x.reshape(B * T, C).astype(jnp.bfloat16)

    # c_attn split into per-output projections (scale folded into q).
    q = linear(xb, params["w_q"], params["b_q"], jnp.bfloat16).reshape(B, T, C)
    k = linear(xb, params["w_k"], params["b_k"], jnp.bfloat16).reshape(B, T, C)
    v = linear(xb, params["w_v"], params["b_v"], jnp.bfloat16).reshape(B, T, C)

    y = attention(q, k, v, n_head)                        # (B, T, C) bf16

    out = linear(y.reshape(B * T, C), params["w_proj"], params["b_proj"],
                 jnp.float32)
    return out.reshape(B, T, C)


def self_attention_reference(x, params, n_head):
    """Pure-JAX reference (f32 math on the bf16-rounded weights/inputs)."""
    B, T, C = x.shape
    hd = C // n_head
    xb = x.astype(jnp.bfloat16).astype(jnp.float32)
    f = lambda name: params[name].astype(jnp.float32)
    q = xb @ f("w_q") + f("b_q")          # scale already folded in
    k = xb @ f("w_k") + f("b_k")
    v = xb @ f("w_v") + f("b_v")
    sh = lambda t: t.reshape(B, T, n_head, hd).transpose(0, 2, 1, 3)
    qh, kh, vh = sh(q), sh(k), sh(v)
    s = jnp.einsum("bhqd,bhkd->bhqk", qh, kh)
    p = jax.nn.softmax(s, axis=-1)
    y = jnp.einsum("bhqk,bhkd->bhqd", p, vh)
    y = y.transpose(0, 2, 1, 3).reshape(B, T, C)
    return y @ f("w_proj") + f("b_proj")


if __name__ == "__main__":
    def run_case(key, B, T, C, n_head):
        kx, kp = jax.random.split(key)
        x = jax.random.normal(kx, (B, T, C), dtype=jnp.float32)
        params = init_params(kp, C, n_head)
        out = jax.block_until_ready(self_attention_forward(x, params, n_head))
        assert out.shape == (B, T, C)
        assert bool(jnp.all(jnp.isfinite(out)))
        ref = self_attention_reference(x, params, n_head)
        rel = float(jnp.linalg.norm(out - ref) / (jnp.linalg.norm(ref) + 1e-6))
        assert rel < 3e-2, f"relative error too large: {rel}"

    key = jax.random.PRNGKey(0)
    k1, k2 = jax.random.split(key)
    # Module-default head count (n_head=6 -> C=48, head_dim=8): exercises the
    # fallback in-kernel head-loop path.
    run_case(k1, B=2, T=8, C=48, n_head=6)
    # head_dim=128: exercises the per-head grid path (optimized layout).
    run_case(k2, B=1, T=128, C=256, n_head=2)
    print("KERNEL_OK")
</pallas_src>

<mosaic_0001>
module attributes {stable_mosaic.version = 11 : i64} {
  func.func @_linear_kernel(%arg0: i32, %arg1: i32, %arg2: i32, %arg3: memref<16x48xbf16, #tpu.memory_space<vmem>>, %arg4: memref<48x48xbf16, #tpu.memory_space<vmem>>, %arg5: memref<1x48xf32, #tpu.memory_space<vmem>>, %arg6: memref<16x48xbf16, #tpu.memory_space<vmem>>, %arg7: memref<16x48xf32, #tpu.memory_space<vmem>>) attributes {dimension_semantics = [#tpu.dimension_semantics<parallel>, #tpu.dimension_semantics<parallel>, #tpu.dimension_semantics<arbitrary>], iteration_bounds = array<i64: 1, 1, 1>, scalar_prefetch = 0 : i64, scratch_operands = 1 : i64, tpu.core_type = #tpu.core_type<tc>, window_params = [{transform_indices = @transform_0, window_bounds = array<i64: 16, 48>}, {transform_indices = @transform_1, window_bounds = array<i64: 48, 48>}, {transform_indices = @transform_2, window_bounds = array<i64: 1, 48>}, {transform_indices = @transform_3, window_bounds = array<i64: 16, 48>}]} {
    %c0_i32 = arith.constant 0 : i32
    %0 = arith.cmpi eq, %arg2, %c0_i32 : i32
    %1 = arith.extui %0 : i1 to i32
    %c0_i32_0 = arith.constant 0 : i32
    %2 = arith.cmpi ne, %1, %c0_i32_0 : i32
    scf.if %2 {
      %cst_10 = arith.constant 0.000000e+00 : f32
      %12 = vector.broadcast %cst_10 : f32 to vector<16x48xf32>
      %c0_11 = arith.constant 0 : index
      %c0_12 = arith.constant 0 : index
      %13 = vector.load %arg7[%c0_11, %c0_12] : memref<16x48xf32, #tpu.memory_space<vmem>>, vector<16x48xf32>
      tpu.vector_store %arg7[%c0_11, %c0_12], %12 {strides = array<i32>} : memref<16x48xf32, #tpu.memory_space<vmem>>, vector<16x48xf32>,
    } else {
    }
    %c0 = arith.constant 0 : index
    %c0_1 = arith.constant 0 : index
    %3 = vector.load %arg7[%c0, %c0_1] : memref<16x48xf32, #tpu.memory_space<vmem>>, vector<16x48xf32>
    %c0_2 = arith.constant 0 : index
    %c0_3 = arith.constant 0 : index
    %4 = vector.load %arg3[%c0_2, %c0_3] : memref<16x48xbf16, #tpu.memory_space<vmem>>, vector<16x48xbf16>
    %c0_4 = arith.constant 0 : index
    %c0_5 = arith.constant 0 : index
    %5 = vector.load %arg4[%c0_4, %c0_5] : memref<48x48xbf16, #tpu.memory_space<vmem>>, vector<48x48xbf16>
    %cst = arith.constant dense<0.000000e+00> : vector<16x48xf32>
    %6 = tpu.matmul %4, %5, %cst {dimension_numbers = #tpu.dot_dimension_numbers<[1], [0], [0], [1], [0, 0, 1, 1], [], []>} : vector<16x48xbf16>, vector<48x48xbf16>, vector<16x48xf32> -> vector<16x48xf32>
    %7 = arith.addf %3, %6 : vector<16x48xf32>
    %c0_6 = arith.constant 0 : index
    %c0_7 = arith.constant 0 : index
    %8 = vector.load %arg7[%c0_6, %c0_7] : memref<16x48xf32, #tpu.memory_space<vmem>>, vector<16x48xf32>
    tpu.vector_store %arg7[%c0_6, %c0_7], %7 {strides = array<i32>} : memref<16x48xf32, #tpu.memory_space<vmem>>, vector<16x48xf32>,
    %c0_i32_8 = arith.constant 0 : i32
    %9 = arith.cmpi eq, %arg2, %c0_i32_8 : i32
    %10 = arith.extui %9 : i1 to i32
    %c0_i32_9 = arith.constant 0 : i32
    %11 = arith.cmpi ne, %10, %c0_i32_9 : i32
    scf.if %11 {
      %c0_10 = arith.constant 0 : index
      %c0_11 = arith.constant 0 : index
      %12 = vector.load %arg7[%c0_10, %c0_11] : memref<16x48xf32, #tpu.memory_space<vmem>>, vector<16x48xf32>
      %c0_12 = arith.constant 0 : index
      %c0_13 = arith.constant 0 : index
      %13 = vector.load %arg5[%c0_12, %c0_13] : memref<1x48xf32, #tpu.memory_space<vmem>>, vector<1x48xf32>
      %14 = vector.broadcast %13 : vector<1x48xf32> to vector<16x48xf32>
      %15 = arith.addf %12, %14 : vector<16x48xf32>
      %16 = arith.truncf %15 : vector<16x48xf32> to vector<16x48xbf16>
      %c0_14 = arith.constant 0 : index
      %c0_15 = arith.constant 0 : index
      %17 = vector.load %arg6[%c0_14, %c0_15] : memref<16x48xbf16, #tpu.memory_space<vmem>>, vector<16x48xbf16>
      tpu.vector_store %arg6[%c0_14, %c0_15], %16 {strides = array<i32>} : memref<16x48xbf16, #tpu.memory_space<vmem>>, vector<16x48xbf16>,
    } else {
    }
    return
  }
  func.func @transform_0(%arg0: i32, %arg1: i32, %arg2: i32) -> (i32, i32) {
    %c0_i32 = arith.constant 0 : i32
    return %arg0, %arg2 : i32, i32
  }
  func.func @transform_1(%arg0: i32, %arg1: i32, %arg2: i32) -> (i32, i32) {
    %c0_i32 = arith.constant 0 : i32
    return %arg2, %arg1 : i32, i32
  }
  func.func @transform_2(%arg0: i32, %arg1: i32, %arg2: i32) -> (i32, i32) {
    %c0_i32 = arith.constant 0 : i32
    %c0_i32_0 = arith.constant 0 : i32
    return %c0_i32, %arg1 : i32, i32
  }
  func.func @transform_3(%arg0: i32, %arg1: i32, %arg2: i32) -> (i32, i32) {
    %c0_i32 = arith.constant 0 : i32
    return %arg0, %arg1 : i32, i32
  }
}

</mosaic_0001>

<bundles_post_ra>
// kernel: tpu_custom_call.1
= control target key start
LH: loop header
LB: loop body
LE: loop exit
PB: predicated region body
PF: predicated region fallthrough
CT: control target
= control target key end

     0   :  { %8 = vsyncpa [#allocation4], 0  ;;  %s304_s0 = inlined_call_operand.hbm [shape: bf16[16,48], index: 0, kind: input, shape index: {}]   ;;  %s305_s1 = inlined_call_operand.hbm [shape: bf16[48,48], index: 1, kind: input, shape index: {}]   ;;  %s306_s2 = inlined_call_operand.vmem [shape: f32[1,48], index: 2, kind: input, shape index: {}]   ;;  %s307_s3 = inlined_call_operand.hbm [shape: bf16[16,48], index: 3, kind: output, shape index: {}]  }
   0x1   :  { %9 = vsyncpa [#allocation7], 0 }
   0x2   :  { %10 = vsyncpa [#allocation5], 0  ;;  %s15_s14 = sshll.u32 %s304_s0, 4  ;;  %s252_s15 = smov [#allocation3]   ;;  %s16_s14 = int_to_ptr.hbm [resolvable:$true] %s15_s14 }
   0x3   :  { %s17_s16 = sshll.u32 %s252_s15, 4  ;;  %s28_s19 = sshll.u32 %s305_s1, 4  ;;  %s18_s16 = int_to_ptr.vmem [resolvable:$true] %s17_s16  ;;  %s29_s19 = int_to_ptr.hbm [resolvable:$true] %s28_s19 }
   0x4   :  { %s253_s20 = smov 64   ;;  %s254_s21 = smov 4  }
   0x5   :  { %23 = dma.hbm_to_vmem [thread:$0]  %s16_s14, 128, %s18_s16, [#allocation4], %s253_s20, %s253_s20, %s254_s21  }
   0x6   :  { %s255_s22 = smov [#allocation6]  }
   0x7   :  { %s30_s23 = sshll.u32 %s255_s22, 4  ;;  %s31_s23 = int_to_ptr.vmem [resolvable:$true] %s30_s23 }
   0x8   :  { %36 = dma.hbm_to_vmem [thread:$0]  %s29_s19, 384, %s31_s23, [#allocation7], %s253_s20, %s253_s20, %s254_s21  }
   0x9   :  { %246 = dma.done.wait [#allocation4], 128  }
   0xa   :  { %247 = vsyncadd [#allocation4], 4294967168 }
   0xb   :  { %248 = dma.done.wait [#allocation7], 384  }
   0xc   :  { %249 = vsyncadd [#allocation7], 4294966912  ;;  %vm52_vm0 = vcmask 392192   ;;  %v256_v0 = vmov 0.0   ;;  %v166_v1 = vld [vmem:[#allocation6 + $0x10] sm:$0xff]  ;;  %v165_v2 = vld [vmem:[#allocation6 + $0x8] sm:$0xff] }
   0xd   :  { %53 = vst.msk [vmem:[#allocation2] sm:$0xff] %vm52_vm0, %v256_v0  ;;  %97 = vmatpush.bf16.msra.mxu0 %v166_v1  ;;  %v164_v3 = vld [vmem:[#allocation6] sm:$0xff]  ;;  %v163_v4 = vld [vmem:[#allocation3] sm:$0xff]  ;;  %v173_v9 = vld [vmem:[%s306_s2] ss:$0 sm:$0xff]  ;;  %vm123_vm1 = vcmask 388096  }
   0xe   :  { %54 = vst.msk [vmem:[#allocation2 + $0x8] sm:$0xff] %vm52_vm0, %v256_v0  ;;  %s257_s24 = smov [#allocation8]   ;;  %s132_s28 = sshll.u32 %s307_s3, 4  ;;  %s133_s28 = int_to_ptr.hbm [resolvable:$true] %s132_s28 }
   0xf   :  { %s130_s25 = sshll.u32 %s257_s24, 4  ;;  %s131_s25 = int_to_ptr.vmem [resolvable:$true] %s130_s25 }
  0x11   :  { %98 = vmatpush.bf16.msra.mxu0 %v165_v2 }
  0x14   :  { %v55_v5 = vld [vmem:[#allocation2] sm:$0xff] }
  0x15   :  { %99 = vmatpush.bf16.msra.mxu0 %v164_v3  ;;  %v56_v8 = vld [vmem:[#allocation2 + $0x8] sm:$0xff] }
  0x18   :  { %162 = vmatmul.msk.bf16.vlgmr.msra.gmra.mxu0 %vm52_vm0, %v163_v4 }
  0x95   :  { %v101_v6 = vpop.f32.mrf.mxu0 }
  0x96   :  { %v106_v7 = vadd.f32 %v101_v6, %v55_v5 }
  0x98   :  { %108 = vst.msk [vmem:[#allocation2] sm:$0xff] %vm52_vm0, %v106_v7 }
  0x9d   :  { %v103_v10 = vpop.f32.mrf.mxu0 }
  0x9e   :  { %v107_v11 = vadd.f32 %v103_v10, %v56_v8 }
  0x9f   :  { %v113_v12 = vld [vmem:[#allocation2] sm:$0xff] }
  0xa0   :  { %109 = vst.msk [vmem:[#allocation2 + $0x8] sm:$0xff] %vm52_vm0, %v107_v11  ;;  %v119_v13 = vadd.f32 %v173_v9, %v113_v12 }
  0xa2   :  { %v121_v14 = vpack.c.bf16 %v119_v13, %v119_v13 }
  0xa4   :  { %124 = vst.msk [vmem:[#allocation8] sm:$0xf] %vm123_vm1, %v121_v14 }
  0xa7   :  { %v114_v15 = vld [vmem:[#allocation2 + $0x8] sm:$0xff] }
  0xa8   :  { %v120_v16 = vadd.f32 %v173_v9, %v114_v15 }
  0xaa   :  { %v122_v17 = vpack.c.bf16 %v120_v16, %v120_v16 }
  0xac   :  { %125 = vst.msk [vmem:[#allocation8 + $0x4] sm:$0xf] %vm123_vm1, %v122_v17 }
  0xad   :  { %138 = dma.vmem_to_hbm [thread:$0]  %s131_s25, 128, %s133_s28, [#allocation5], %s253_s20, %s253_s20, %s254_s21  }
  0xae   :  { %250 = dma.done.wait [#allocation5], 128  }
  0xaf   :  { %251 = vsyncadd [#allocation5], 4294967168 }
  0xb0   :  { %143 = vsyncpa [#allocation4], 1 }
  0xb1   :  { %144 = vsyncpa [#allocation7], 1 }
  0xb2   :  { %145 = vsyncpa [#allocation5], 1 }

</bundles_post_ra>
